<compile_context>
chip_gen: v7x
topology: tpu7x:2x2x1
jax: 0.10.0
libtpu: 0.0.40
codegen_flags: <defaults>
</compile_context>

<pallas_src>
import math

import jax
import jax.numpy as jnp
from jax.experimental import pallas as pl
from jax.experimental.pallas import tpu as pltpu


def _round_up(x: int, m: int) -> int:
    return ((x + m - 1) // m) * m


# --------------------------------------------------------------------------
# Kernel: one batch tile per grid step; all weights stay VMEM-resident.
# --------------------------------------------------------------------------
def _pair_linears_kernel(src_ref, dst_ref, w_src_ref, w_dst_ref, b_in_ref,
                         w_out_ref, b_out_ref, out_ref):
    cdt = w_src_ref.dtype                                   # compute dtype (bf16)
    # src/dst projections: cast f32->bf16 in-register, accumulate f32 on the MXU.
    s = jnp.dot(src_ref[...].astype(cdt), w_src_ref[...],
                preferred_element_type=jnp.float32)
    d = jnp.dot(dst_ref[...].astype(cdt), w_dst_ref[...],
                preferred_element_type=jnp.float32)
    # + (bs + bd), relu.  Dropout(p=0.0, module default) is the identity.
    # TODO(synk): only activation='relu' (the module default) is implemented.
    h = jnp.maximum(s + d + b_in_ref[...], 0.0)
    # output_linear
    o = jnp.dot(h.astype(cdt), w_out_ref[...],
                preferred_element_type=jnp.float32)
    out_ref[...] = (o + b_out_ref[...]).astype(out_ref.dtype)


# --------------------------------------------------------------------------
# One-time parameter preparation (transpose / fuse biases / cast)
# --------------------------------------------------------------------------
def prepare_pair_linears_params(params, compute_dtype=jnp.bfloat16):
    """Convert PyTorch-convention [out, in] params into kernel-ready tensors."""
    ws, wd, wo = params["ws"], params["wd"], params["wo"]
    bs, bd, bo = params["bs"], params["bd"], params["bo"]
    hidden_dim = ws.shape[0]
    output_dim = wo.shape[0]
    return {
        "w_src": jnp.asarray(ws.T, compute_dtype),               # [src, hidden]
        "w_dst": jnp.asarray(wd.T, compute_dtype),               # [dst, hidden]
        "b_in": jnp.asarray(bs + bd, jnp.float32).reshape(1, hidden_dim),
        "w_out": jnp.asarray(wo.T, compute_dtype),               # [hidden, out]
        "b_out": jnp.asarray(bo, jnp.float32).reshape(1, output_dim),
    }


# --------------------------------------------------------------------------
# Tiling / VMEM planning
# --------------------------------------------------------------------------
def _choose_tile_n(n, tile_n_max):
    if n <= tile_n_max and n < 512:
        return n                                   # single full-batch tile
    num_tiles = max(2, pl.cdiv(n, tile_n_max))     # >=2 steps -> both v7x TCs
    return _round_up(pl.cdiv(n, num_tiles), 16)    # 16 = bf16 sublane pack


def _vmem_need_bytes(tile_n, src_dim, dst_dim, hidden_dim, output_dim, w_itemsize):
    weight_bytes = ((src_dim + dst_dim) * hidden_dim
                    + hidden_dim * output_dim) * w_itemsize \
                   + (hidden_dim + output_dim) * 4
    return (2 * weight_bytes                                  # worst-case 2-buf
            + 2 * tile_n * (src_dim + dst_dim) * 4            # f32 input tiles
            + 2 * tile_n * output_dim * 4                     # f32 output tiles
            + 2 * tile_n * hidden_dim * 4)                    # f32 h intermediate


# --------------------------------------------------------------------------
# Wrapper
# --------------------------------------------------------------------------
def pair_linears(src_inputs, dst_inputs, prepared, *, tile_n_max=1024,
                 out_dtype=jnp.float32):
    """Fused PairLinears forward.

    src_inputs: [N, src_dim] f32
    dst_inputs: [N, dst_dim] f32
    prepared:   output of prepare_pair_linears_params
    returns:    [N, output_dim] (out_dtype)
    """
    n, src_dim = src_inputs.shape
    dst_dim = dst_inputs.shape[1]
    w_src, w_dst, w_out = prepared["w_src"], prepared["w_dst"], prepared["w_out"]
    b_in, b_out = prepared["b_in"], prepared["b_out"]
    hidden_dim = w_src.shape[1]
    output_dim = w_out.shape[1]
    w_itemsize = jnp.dtype(w_src.dtype).itemsize

    # VMEM budget: queried capacity (128 MiB v5e/v6e, 64 MiB v7x) minus headroom
    # for Mosaic internal scratch.
    try:
        vmem_cap = int(pltpu.get_tpu_info().vmem_capacity_bytes)
    except Exception:
        vmem_cap = 64 << 20                       # conservative (v7x per-TC)
    vmem_budget = (vmem_cap * 3) // 4

    # Batch tiling; shrink tile_n rather than weight residency if over budget.
    tile_n = _choose_tile_n(n, tile_n_max)
    while (tile_n > 16 and
           _vmem_need_bytes(tile_n, src_dim, dst_dim, hidden_dim, output_dim,
                            w_itemsize) > vmem_budget):
        tile_n = _round_up(max(16, tile_n // 2), 16)
    grid_n = pl.cdiv(n, tile_n)        # last block may be partial (Pallas masks)

    need = _vmem_need_bytes(tile_n, src_dim, dst_dim, hidden_dim, output_dim,
                            w_itemsize)
    vmem_limit = int(min(max(2 * need, 16 << 20), vmem_budget))

    weight_hbm_bytes = ((src_dim + dst_dim) * hidden_dim
                        + hidden_dim * output_dim) * w_itemsize \
                       + (hidden_dim + output_dim) * 4
    cost = pl.CostEstimate(
        flops=2 * n * ((src_dim + dst_dim) * hidden_dim
                       + hidden_dim * output_dim),
        transcendentals=0,
        bytes_accessed=(n * (src_dim + dst_dim)
                        * jnp.dtype(src_inputs.dtype).itemsize
                        + weight_hbm_bytes
                        + n * output_dim * jnp.dtype(out_dtype).itemsize),
    )

    def run(weight_mode):
        def wspec(shape):
            if weight_mode is None:
                return pl.BlockSpec(shape, lambda i: (0, 0))
            return pl.BlockSpec(shape, lambda i: (0, 0),
                                pipeline_mode=weight_mode)
        return pl.pallas_call(
            _pair_linears_kernel,
            out_shape=jax.ShapeDtypeStruct((n, output_dim), out_dtype),
            grid=(grid_n,),
            in_specs=[
                # activations: streamed per batch tile, pipelined
                pl.BlockSpec((tile_n, src_dim), lambda i: (i, 0)),
                pl.BlockSpec((tile_n, dst_dim), lambda i: (i, 0)),
                # weights/biases: constant block index -> VMEM-resident
                wspec((src_dim, hidden_dim)),
                wspec((dst_dim, hidden_dim)),
                wspec((1, hidden_dim)),
                wspec((hidden_dim, output_dim)),
                wspec((1, output_dim)),
            ],
            out_specs=pl.BlockSpec((tile_n, output_dim), lambda i: (i, 0)),
            compiler_params=pltpu.CompilerParams(
                dimension_semantics=("parallel",),
                vmem_limit_bytes=vmem_limit,
            ),
            cost_estimate=cost,
        )(src_inputs, dst_inputs, w_src, w_dst, b_in, w_out, b_out)

    try:
        # Grid-invariant weights/biases: single buffering (their block index
        # never changes, so a second pipeline buffer is pure VMEM waste).
        return run(pl.Buffered(1))
    except Exception:
        # pipeline_mode / Buffered(1) unsupported on this jax: default buffering.
        return run(None)


# --------------------------------------------------------------------------
# Init (matches PyTorch module: xavier_normal_(gain=relu) + default bias init)
# --------------------------------------------------------------------------
def _xavier_normal(key, out_dim, in_dim, gain):
    std = gain * math.sqrt(2.0 / (in_dim + out_dim))
    return std * jax.random.normal(key, (out_dim, in_dim), dtype=jnp.float32)


def init_pair_linears_params(key, src_dim, dst_dim, hidden_dim, output_dim):
    gain = math.sqrt(2.0)  # nn.init.calculate_gain('relu')
    k = jax.random.split(key, 6)
    return {
        "ws": _xavier_normal(k[0], hidden_dim, src_dim, gain),
        "wd": _xavier_normal(k[1], hidden_dim, dst_dim, gain),
        "wo": _xavier_normal(k[2], output_dim, hidden_dim, gain),
        "bs": jax.random.uniform(k[3], (hidden_dim,), jnp.float32,
                                 -1.0 / math.sqrt(src_dim), 1.0 / math.sqrt(src_dim)),
        "bd": jax.random.uniform(k[4], (hidden_dim,), jnp.float32,
                                 -1.0 / math.sqrt(dst_dim), 1.0 / math.sqrt(dst_dim)),
        "bo": jax.random.uniform(k[5], (output_dim,), jnp.float32,
                                 -1.0 / math.sqrt(hidden_dim), 1.0 / math.sqrt(hidden_dim)),
    }


# --------------------------------------------------------------------------
# References
# --------------------------------------------------------------------------
def pair_linears_ref_f32(src_inputs, dst_inputs, params):
    s = src_inputs @ params["ws"].T + params["bs"]
    d = dst_inputs @ params["wd"].T + params["bd"]
    h = jnp.maximum(s + d, 0.0)
    return h @ params["wo"].T + params["bo"]


def pair_linears_ref_bf16(src_inputs, dst_inputs, params):
    # Mirrors the kernel numerics: bf16 matmul operands, f32 accumulation.
    bf = jnp.bfloat16
    s = jnp.dot(src_inputs.astype(bf), params["ws"].T.astype(bf),
                preferred_element_type=jnp.float32) + params["bs"]
    d = jnp.dot(dst_inputs.astype(bf), params["wd"].T.astype(bf),
                preferred_element_type=jnp.float32) + params["bd"]
    h = jnp.maximum(s + d, 0.0)
    return jnp.dot(h.astype(bf), params["wo"].T.astype(bf),
                   preferred_element_type=jnp.float32) + params["bo"]


if __name__ == "__main__":
    key = jax.random.PRNGKey(0)
    k_param, k_src, k_dst = jax.random.split(key, 3)

    N, SRC_DIM, DST_DIM, HIDDEN_DIM, OUTPUT_DIM = 8, 32, 16, 64, 32

    params = init_pair_linears_params(k_param, SRC_DIM, DST_DIM,
                                      HIDDEN_DIM, OUTPUT_DIM)
    prepared = prepare_pair_linears_params(params)

    src = jax.random.normal(k_src, (N, SRC_DIM), dtype=jnp.float32)
    dst = jax.random.normal(k_dst, (N, DST_DIM), dtype=jnp.float32)

    out = pair_linears(src, dst, prepared)
    out = jax.block_until_ready(out)

    assert out.shape == (N, OUTPUT_DIM), out.shape
    # Tight check vs. a reference with matching bf16-operand / f32-accum numerics.
    ref_bf16 = pair_linears_ref_bf16(src, dst, params)
    assert jnp.allclose(out, ref_bf16, atol=2e-3, rtol=2e-3), \
        float(jnp.max(jnp.abs(out - ref_bf16)))
    # Coarse check vs. the pure-f32 mathematical reference.
    ref_f32 = pair_linears_ref_f32(src, dst, params)
    assert jnp.allclose(out, ref_f32, atol=5e-2, rtol=5e-2), \
        float(jnp.max(jnp.abs(out - ref_f32)))

    print("KERNEL_OK")
</pallas_src>

<mosaic_0001>
module attributes {stable_mosaic.version = 11 : i64} {
  func.func @_pair_linears_kernel(%arg0: i32, %arg1: memref<8x32xf32, #tpu.memory_space<vmem>>, %arg2: memref<8x16xf32, #tpu.memory_space<vmem>>, %arg3: memref<32x64xbf16, #tpu.memory_space<vmem>>, %arg4: memref<16x64xbf16, #tpu.memory_space<vmem>>, %arg5: memref<1x64xf32, #tpu.memory_space<vmem>>, %arg6: memref<64x32xbf16, #tpu.memory_space<vmem>>, %arg7: memref<1x32xf32, #tpu.memory_space<vmem>>, %arg8: memref<8x32xf32, #tpu.memory_space<vmem>>) attributes {dimension_semantics = [#tpu.dimension_semantics<parallel>], iteration_bounds = array<i64: 1>, scalar_prefetch = 0 : i64, scratch_operands = 0 : i64, tpu.core_type = #tpu.core_type<tc>, window_params = [{transform_indices = @transform_0, window_bounds = array<i64: 8, 32>}, {transform_indices = @transform_1, window_bounds = array<i64: 8, 16>}, {pipeline_mode = #tpu.pipeline_mode<synchronous>, transform_indices = @transform_2, window_bounds = array<i64: 32, 64>}, {pipeline_mode = #tpu.pipeline_mode<synchronous>, transform_indices = @transform_3, window_bounds = array<i64: 16, 64>}, {pipeline_mode = #tpu.pipeline_mode<synchronous>, transform_indices = @transform_4, window_bounds = array<i64: 1, 64>}, {pipeline_mode = #tpu.pipeline_mode<synchronous>, transform_indices = @transform_5, window_bounds = array<i64: 64, 32>}, {pipeline_mode = #tpu.pipeline_mode<synchronous>, transform_indices = @transform_6, window_bounds = array<i64: 1, 32>}, {transform_indices = @transform_7, window_bounds = array<i64: 8, 32>}]} {
    %c0 = arith.constant 0 : index
    %c0_0 = arith.constant 0 : index
    %0 = vector.load %arg1[%c0, %c0_0] : memref<8x32xf32, #tpu.memory_space<vmem>>, vector<8x32xf32>
    %1 = arith.truncf %0 : vector<8x32xf32> to vector<8x32xbf16>
    %c0_1 = arith.constant 0 : index
    %c0_2 = arith.constant 0 : index
    %2 = vector.load %arg3[%c0_1, %c0_2] : memref<32x64xbf16, #tpu.memory_space<vmem>>, vector<32x64xbf16>
    %cst = arith.constant dense<0.000000e+00> : vector<8x64xf32>
    %3 = tpu.matmul %1, %2, %cst {dimension_numbers = #tpu.dot_dimension_numbers<[1], [0], [0], [1], [0, 0, 1, 1], [], []>} : vector<8x32xbf16>, vector<32x64xbf16>, vector<8x64xf32> -> vector<8x64xf32>
    %c0_3 = arith.constant 0 : index
    %c0_4 = arith.constant 0 : index
    %4 = vector.load %arg2[%c0_3, %c0_4] : memref<8x16xf32, #tpu.memory_space<vmem>>, vector<8x16xf32>
    %5 = arith.truncf %4 : vector<8x16xf32> to vector<8x16xbf16>
    %c0_5 = arith.constant 0 : index
    %c0_6 = arith.constant 0 : index
    %6 = vector.load %arg4[%c0_5, %c0_6] : memref<16x64xbf16, #tpu.memory_space<vmem>>, vector<16x64xbf16>
    %cst_7 = arith.constant dense<0.000000e+00> : vector<8x64xf32>
    %7 = tpu.matmul %5, %6, %cst_7 {dimension_numbers = #tpu.dot_dimension_numbers<[1], [0], [0], [1], [0, 0, 1, 1], [], []>} : vector<8x16xbf16>, vector<16x64xbf16>, vector<8x64xf32> -> vector<8x64xf32>
    %8 = arith.addf %3, %7 : vector<8x64xf32>
    %c0_8 = arith.constant 0 : index
    %c0_9 = arith.constant 0 : index
    %9 = vector.load %arg5[%c0_8, %c0_9] : memref<1x64xf32, #tpu.memory_space<vmem>>, vector<1x64xf32>
    %10 = vector.broadcast %9 : vector<1x64xf32> to vector<8x64xf32>
    %11 = arith.addf %8, %10 : vector<8x64xf32>
    %cst_10 = arith.constant 0.000000e+00 : f32
    %12 = vector.broadcast %cst_10 : f32 to vector<8x64xf32>
    %13 = arith.maximumf %11, %12 : vector<8x64xf32>
    %14 = arith.truncf %13 : vector<8x64xf32> to vector<8x64xbf16>
    %c0_11 = arith.constant 0 : index
    %c0_12 = arith.constant 0 : index
    %15 = vector.load %arg6[%c0_11, %c0_12] : memref<64x32xbf16, #tpu.memory_space<vmem>>, vector<64x32xbf16>
    %cst_13 = arith.constant dense<0.000000e+00> : vector<8x32xf32>
    %16 = tpu.matmul %14, %15, %cst_13 {dimension_numbers = #tpu.dot_dimension_numbers<[1], [0], [0], [1], [0, 0, 1, 1], [], []>} : vector<8x64xbf16>, vector<64x32xbf16>, vector<8x32xf32> -> vector<8x32xf32>
    %c0_14 = arith.constant 0 : index
    %c0_15 = arith.constant 0 : index
    %17 = vector.load %arg7[%c0_14, %c0_15] : memref<1x32xf32, #tpu.memory_space<vmem>>, vector<1x32xf32>
    %18 = vector.broadcast %17 : vector<1x32xf32> to vector<8x32xf32>
    %19 = arith.addf %16, %18 : vector<8x32xf32>
    %c0_16 = arith.constant 0 : index
    %c0_17 = arith.constant 0 : index
    %20 = vector.load %arg8[%c0_16, %c0_17] : memref<8x32xf32, #tpu.memory_space<vmem>>, vector<8x32xf32>
    tpu.vector_store %arg8[%c0_16, %c0_17], %19 {strides = array<i32>} : memref<8x32xf32, #tpu.memory_space<vmem>>, vector<8x32xf32>,
    return
  }
  func.func @transform_0(%arg0: i32) -> (i32, i32) {
    %c0_i32 = arith.constant 0 : i32
    %c0_i32_0 = arith.constant 0 : i32
    return %arg0, %c0_i32 : i32, i32
  }
  func.func @transform_1(%arg0: i32) -> (i32, i32) {
    %c0_i32 = arith.constant 0 : i32
    %c0_i32_0 = arith.constant 0 : i32
    return %arg0, %c0_i32 : i32, i32
  }
  func.func @transform_2(%arg0: i32) -> (i32, i32) {
    %c0_i32 = arith.constant 0 : i32
    %c0_i32_0 = arith.constant 0 : i32
    %c0_i32_1 = arith.constant 0 : i32
    return %c0_i32, %c0_i32_0 : i32, i32
  }
  func.func @transform_3(%arg0: i32) -> (i32, i32) {
    %c0_i32 = arith.constant 0 : i32
    %c0_i32_0 = arith.constant 0 : i32
    %c0_i32_1 = arith.constant 0 : i32
    return %c0_i32, %c0_i32_0 : i32, i32
  }
  func.func @transform_4(%arg0: i32) -> (i32, i32) {
    %c0_i32 = arith.constant 0 : i32
    %c0_i32_0 = arith.constant 0 : i32
    %c0_i32_1 = arith.constant 0 : i32
    return %c0_i32, %c0_i32_0 : i32, i32
  }
  func.func @transform_5(%arg0: i32) -> (i32, i32) {
    %c0_i32 = arith.constant 0 : i32
    %c0_i32_0 = arith.constant 0 : i32
    %c0_i32_1 = arith.constant 0 : i32
    return %c0_i32, %c0_i32_0 : i32, i32
  }
  func.func @transform_6(%arg0: i32) -> (i32, i32) {
    %c0_i32 = arith.constant 0 : i32
    %c0_i32_0 = arith.constant 0 : i32
    %c0_i32_1 = arith.constant 0 : i32
    return %c0_i32, %c0_i32_0 : i32, i32
  }
  func.func @transform_7(%arg0: i32) -> (i32, i32) {
    %c0_i32 = arith.constant 0 : i32
    %c0_i32_0 = arith.constant 0 : i32
    return %arg0, %c0_i32 : i32, i32
  }
}

module attributes {stable_mosaic.version = 11 : i64} {
  func.func @_pair_linears_kernel(%arg0: i32, %arg1: memref<8x32xf32, #tpu.memory_space<vmem>>, %arg2: memref<8x16xf32, #tpu.memory_space<vmem>>, %arg3: memref<32x64xbf16, #tpu.memory_space<vmem>>, %arg4: memref<16x64xbf16, #tpu.memory_space<vmem>>, %arg5: memref<1x64xf32, #tpu.memory_space<vmem>>, %arg6: memref<64x32xbf16, #tpu.memory_space<vmem>>, %arg7: memref<1x32xf32, #tpu.memory_space<vmem>>, %arg8: memref<8x32xf32, #tpu.memory_space<vmem>>) attributes {dimension_semantics = [#tpu.dimension_semantics<parallel>], iteration_bounds = array<i64: 1>, scalar_prefetch = 0 : i64, scratch_operands = 0 : i64, tpu.core_type = #tpu.core_type<tc>, window_params = [{transform_indices = @transform_0, window_bounds = array<i64: 8, 32>}, {transform_indices = @transform_1, window_bounds = array<i64: 8, 16>}, {pipeline_mode = #tpu.pipeline_mode<synchronous>, transform_indices = @transform_2, window_bounds = array<i64: 32, 64>}, {pipeline_mode = #tpu.pipeline_mode<synchronous>, transform_indices = @transform_3, window_bounds = array<i64: 16, 64>}, {pipeline_mode = #tpu.pipeline_mode<synchronous>, transform_indices = @transform_4, window_bounds = array<i64: 1, 64>}, {pipeline_mode = #tpu.pipeline_mode<synchronous>, transform_indices = @transform_5, window_bounds = array<i64: 64, 32>}, {pipeline_mode = #tpu.pipeline_mode<synchronous>, transform_indices = @transform_6, window_bounds = array<i64: 1, 32>}, {transform_indices = @transform_7, window_bounds = array<i64: 8, 32>}]} {
    %c0 = arith.constant 0 : index
    %c0_0 = arith.constant 0 : index
    %0 = vector.load %arg1[%c0, %c0_0] : memref<8x32xf32, #tpu.memory_space<vmem>>, vector<8x32xf32>
    %1 = arith.truncf %0 : vector<8x32xf32> to vector<8x32xbf16>
    %c0_1 = arith.constant 0 : index
    %c0_2 = arith.constant 0 : index
    %2 = vector.load %arg3[%c0_1, %c0_2] : memref<32x64xbf16, #tpu.memory_space<vmem>>, vector<32x64xbf16>
    %cst = arith.constant dense<0.000000e+00> : vector<8x64xf32>
    %3 = tpu.matmul %1, %2, %cst {dimension_numbers = #tpu.dot_dimension_numbers<[1], [0], [0], [1], [0, 0, 1, 1], [], []>} : vector<8x32xbf16>, vector<32x64xbf16>, vector<8x64xf32> -> vector<8x64xf32>
    %c0_3 = arith.constant 0 : index
    %c0_4 = arith.constant 0 : index
    %4 = vector.load %arg2[%c0_3, %c0_4] : memref<8x16xf32, #tpu.memory_space<vmem>>, vector<8x16xf32>
    %5 = arith.truncf %4 : vector<8x16xf32> to vector<8x16xbf16>
    %c0_5 = arith.constant 0 : index
    %c0_6 = arith.constant 0 : index
    %6 = vector.load %arg4[%c0_5, %c0_6] : memref<16x64xbf16, #tpu.memory_space<vmem>>, vector<16x64xbf16>
    %cst_7 = arith.constant dense<0.000000e+00> : vector<8x64xf32>
    %7 = tpu.matmul %5, %6, %cst_7 {dimension_numbers = #tpu.dot_dimension_numbers<[1], [0], [0], [1], [0, 0, 1, 1], [], []>} : vector<8x16xbf16>, vector<16x64xbf16>, vector<8x64xf32> -> vector<8x64xf32>
    %8 = arith.addf %3, %7 : vector<8x64xf32>
    %c0_8 = arith.constant 0 : index
    %c0_9 = arith.constant 0 : index
    %9 = vector.load %arg5[%c0_8, %c0_9] : memref<1x64xf32, #tpu.memory_space<vmem>>, vector<1x64xf32>
    %10 = vector.broadcast %9 : vector<1x64xf32> to vector<8x64xf32>
    %11 = arith.addf %8, %10 : vector<8x64xf32>
    %cst_10 = arith.constant 0.000000e+00 : f32
    %12 = vector.broadcast %cst_10 : f32 to vector<8x64xf32>
    %13 = arith.maximumf %11, %12 : vector<8x64xf32>
    %14 = arith.truncf %13 : vector<8x64xf32> to vector<8x64xbf16>
    %c0_11 = arith.constant 0 : index
    %c0_12 = arith.constant 0 : index
    %15 = vector.load %arg6[%c0_11, %c0_12] : memref<64x32xbf16, #tpu.memory_space<vmem>>, vector<64x32xbf16>
    %cst_13 = arith.constant dense<0.000000e+00> : vector<8x32xf32>
    %16 = tpu.matmul %14, %15, %cst_13 {dimension_numbers = #tpu.dot_dimension_numbers<[1], [0], [0], [1], [0, 0, 1, 1], [], []>} : vector<8x64xbf16>, vector<64x32xbf16>, vector<8x32xf32> -> vector<8x32xf32>
    %c0_14 = arith.constant 0 : index
    %c0_15 = arith.constant 0 : index
    %17 = vector.load %arg7[%c0_14, %c0_15] : memref<1x32xf32, #tpu.memory_space<vmem>>, vector<1x32xf32>
    %18 = vector.broadcast %17 : vector<1x32xf32> to vector<8x32xf32>
    %19 = arith.addf %16, %18 : vector<8x32xf32>
    %c0_16 = arith.constant 0 : index
    %c0_17 = arith.constant 0 : index
    %20 = vector.load %arg8[%c0_16, %c0_17] : memref<8x32xf32, #tpu.memory_space<vmem>>, vector<8x32xf32>
    tpu.vector_store %arg8[%c0_16, %c0_17], %19 {strides = array<i32>} : memref<8x32xf32, #tpu.memory_space<vmem>>, vector<8x32xf32>,
    return
  }
  func.func @transform_0(%arg0: i32) -> (i32, i32) {
    %c0_i32 = arith.constant 0 : i32
    %c0_i32_0 = arith.constant 0 : i32
    return %arg0, %c0_i32 : i32, i32
  }
  func.func @transform_1(%arg0: i32) -> (i32, i32) {
    %c0_i32 = arith.constant 0 : i32
    %c0_i32_0 = arith.constant 0 : i32
    return %arg0, %c0_i32 : i32, i32
  }
  func.func @transform_2(%arg0: i32) -> (i32, i32) {
    %c0_i32 = arith.constant 0 : i32
    %c0_i32_0 = arith.constant 0 : i32
    %c0_i32_1 = arith.constant 0 : i32
    return %c0_i32, %c0_i32_0 : i32, i32
  }
  func.func @transform_3(%arg0: i32) -> (i32, i32) {
    %c0_i32 = arith.constant 0 : i32
    %c0_i32_0 = arith.constant 0 : i32
    %c0_i32_1 = arith.constant 0 : i32
    return %c0_i32, %c0_i32_0 : i32, i32
  }
  func.func @transform_4(%arg0: i32) -> (i32, i32) {
    %c0_i32 = arith.constant 0 : i32
    %c0_i32_0 = arith.constant 0 : i32
    %c0_i32_1 = arith.constant 0 : i32
    return %c0_i32, %c0_i32_0 : i32, i32
  }
  func.func @transform_5(%arg0: i32) -> (i32, i32) {
    %c0_i32 = arith.constant 0 : i32
    %c0_i32_0 = arith.constant 0 : i32
    %c0_i32_1 = arith.constant 0 : i32
    return %c0_i32, %c0_i32_0 : i32, i32
  }
  func.func @transform_6(%arg0: i32) -> (i32, i32) {
    %c0_i32 = arith.constant 0 : i32
    %c0_i32_0 = arith.constant 0 : i32
    %c0_i32_1 = arith.constant 0 : i32
    return %c0_i32, %c0_i32_0 : i32, i32
  }
  func.func @transform_7(%arg0: i32) -> (i32, i32) {
    %c0_i32 = arith.constant 0 : i32
    %c0_i32_0 = arith.constant 0 : i32
    return %arg0, %c0_i32 : i32, i32
  }
}

</mosaic_0001>

<bundles_post_ra>
// kernel: tpu_custom_call.1
= control target key start
LH: loop header
LB: loop body
LE: loop exit
PB: predicated region body
PF: predicated region fallthrough
CT: control target
= control target key end

     0   :  { %v334_v1 = vmov 0.0   ;;  %vm44_vm0 = vcmask 130048   ;;  %vm335_vm1 = vmmov 0   ;;  %s424_s0 = inlined_call_operand.vmem [shape: f32[8,32], index: 0, kind: input, shape index: {}]   ;;  %s425_s1 = inlined_call_operand.vmem [shape: f32[8,16], index: 1, kind: input, shape index: {}]   ;;  %s426_s2 = inlined_call_operand.vmem [shape: bf16[32,64], index: 2, kind: input, shape index: {}]   ;;  %s427_s3 = inlined_call_operand.vmem [shape: bf16[16,64], index: 3, kind: input, shape index: {}]   ;;  %s428_s4 = inlined_call_operand.vmem [shape: f32[1,64], index: 4, kind: input, shape index: {}]   ;;  %s429_s5 = inlined_call_operand.vmem [shape: bf16[64,32], index: 5, kind: input, shape index: {}]   ;;  %s430_s6 = inlined_call_operand.vmem [shape: f32[1,32], index: 6, kind: input, shape index: {}]   ;;  %s431_s7 = inlined_call_operand.hbm [shape: f32[8,32], index: 7, kind: output, shape index: {}]  }
   0x1   :  { %v303_v0 = vld [vmem:[%s427_s3] sm:$0xff]   ;;  %274 = vmatprep.subr.bf16.mxu1 %v334_v1  ;;  %288 = vmatprep.subr.bf16.mxu0 %v334_v1  ;;  %v305_v5 = vld [vmem:[%s426_s2 + $0x8] sm:$0xff]  }
   0x2   :  { %v34_v2 = vld [vmem:[%s425_s1] sm:$0xff]  ;;  %275 = vmatpush3.bf16.msra.mxu1 %v303_v0  ;;  %276 = vmatprep.mubr.msk.bf16.mxu1 %vm335_vm1, %v334_v1 }
   0x3   :  { %v304_v3 = vld [vmem:[%s426_s2] sm:$0xff]   ;;  %v35_v4 = vpack.c.bf16 %v34_v2, %v34_v2  ;;  %280 = vmatprep.subr.bf16.mxu1 %v334_v1  ;;  %296 = vmatprep.mubr.msk.bf16.mxu0 %vm335_vm1, %v334_v1 }
   0x4   :  { %v28_v6 = vld [vmem:[%s424_s0] sm:$0xff] }
   0x5   :  { %277 = vmatmul.mubr.msk.bf16.vlgmr.msra.gmra.mrb[0].mxu1 %vm44_vm0, %v35_v4 }
   0x6   :  { %281 = vmatpush3.bf16.msra.mxu1 %v304_v3  ;;  %284 = vmatprep.mubr.msk.bf16.mxu1 %vm335_vm1, %v334_v1 }
   0x7   :  { %12 = vsyncpa [#allocation3], 0  ;;  %282 = vmatprep.subr.bf16.mxu1 %v334_v1  ;;  %v29_v7 = vpack.c.bf16 %v28_v6, %v28_v6  ;;  %vm100_vm2 = vcmask 261120   ;;  %v306_v8 = vld [vmem:[%s429_s5] sm:$0xff]   ;;  %v307_v9 = vld [vmem:[%s429_s5 + $0x8] sm:$0xff]   ;;  %vm193_vm3 = vcmask 523264  }
   0x8   :  { %289 = vmatpush3.bf16.msra.mxu0 %v306_v8  ;;  %v308_v10 = vld [vmem:[%s429_s5 + $0x10] sm:$0xff]   ;;  %v309_v11 = vld [vmem:[%s429_s5 + $0x18] sm:$0xff]   ;;  %v257_v17 = vld [vmem:[%s428_s4] ss:$0 sm:$0xff]  ;;  %s336_s18 = smov [#allocation2]  }
   0x9   :  { %290 = vmatprep.subr.bf16.mxu0 %v334_v1  ;;  %v258_v25 = vld [vmem:[%s430_s6] ss:$0 sm:$0xff]  ;;  %s244_s19 = sshll.u32 %s336_s18, 4  ;;  %s245_s19 = int_to_ptr.vmem [resolvable:$true] %s244_s19 }
   0xa   :  { %283 = vmatpush3.bf16.msra.mxu1 %v305_v5  ;;  %s310_s4 = scalar_lea.vmem %s245_s19, 128  ;;  %p315_p1 = scmp.lt.s32.totalorder %s245_s19, %s245_s19 }
   0xb   :  { %p311_p0 = scmp.ne.s32.totalorder %s245_s19, %s310_s4  ;;  %p316_p2 = scmp.lt.s32.totalorder %s310_s4, %s310_s4 }
   0xc   :  { %291 = vmatpush3.bf16.msra.mxu0 %v307_v9 }
   0xd   :  { %285 = vmatmul.mubr.msk.bf16.vlgmr.msra.gmra.mrb[4].mxu1 %vm100_vm2, %v29_v7  ;;  %292 = vmatprep.subr.bf16.mxu0 %v334_v1  ;;  %p317_p3 = por %p316_p2, %p315_p1 }
   0xf   :  { %p318_p4 = pnand %p317_p3, %p311_p0 }
  0x10   :  { %293 = vmatpush3.bf16.msra.mxu0 %v308_v10 }
  0x11   :  { %294 = vmatprep.subr.bf16.mxu0 %v334_v1 }
  0x14   :  { %295 = vmatpush3.bf16.msra.mxu0 %v309_v11 }
  0xd8   :  { %v82_v12 = vpop.f32.mrb[0].mxu1 }
  0xd9   :  { %v278_v13 = vpop.f32.mrb[1].mxu1 }
  0xda   :  { %v85_v14 = vpop.f32.mrb[2].mxu1 }
  0xdb   :  { %v279_v15 = vpop.f32.mrb[3].mxu1 }
  0xe0   :  { %v138_v16 = vpop.f32.mrb[4].mxu1 }
  0xe1   :  { %v139_v18 = vadd.f32 %v138_v16, %v82_v12  ;;  %v286_v19 = vpop.f32.mrb[5].mxu1 }
  0xe2   :  { %v141_v20 = vpop.f32.mrb[6].mxu1 }
  0xe3   :  { %v151_v21 = vadd.f32 %v257_v17, %v139_v18  ;;  %v287_v22 = vpop.f32.mrb[7].mxu1 }
  0xe5   :  { %v152_v23 = vmax.f32 %v151_v21, 0.0 }
  0xe7   :  { %v153_v24 = vpack.c.bf16 %v152_v23, %v152_v23 }
  0xe9   :  { %297 = vmatmul.mubr.msk.bf16.vlgmr.msra.gmra.mrb[0].mxu0 %vm193_vm3, %v153_v24 }
 0x1bc   :  { %v231_v26 = vpop.f32.mrb[0].mxu0 }
 0x1bd   :  { %v232_v27 = vadd.f32 %v258_v25, %v231_v26  ;;  %v298_v28 = vpop.f32.mrb[1].mxu0 }
 0x1be   :  { %v234_v29 = vpop.f32.mrb[2].mxu0 }
 0x1bf   :  { %237 = vst.msk [vmem:[#allocation2] sm:$0xff] %vm100_vm2, %v232_v27  ;;  %v299_v30 = vpop.f32.mrb[3].mxu0 }
 0x1c0   :  { %321 = shalt.err (!%p318_p4)
}
 0x1c1   :  { %s322_s6 = scalar_lea.hbm %s431_s7, 128 }
 0x1c2   :  { %p323_p5 = scmp.ne.s32.totalorder %s431_s7, %s322_s6  ;;  %p326_p6 = scmp.lt.u32.totalorder %s322_s6, %s431_s7 }
 0x1c4   :  { %p328_p7 = pnand %p326_p6, %p323_p5 }
 0x1c6   :  { %331 = shalt.err (!%p328_p7)
}
 0x1c7   :  { %247 = dma.vmem_to_hbm [thread:$0]  %s245_s19, 128, %s431_s7, [#allocation3]  }
 0x1c8   :  { %332 = dma.done.wait [#allocation3], 128  }
 0x1c9   :  { %333 = vsyncadd [#allocation3], 4294967168 }
 0x1ca   :  { %251 = vsyncpa [#allocation3], 1 }

// kernel: tpu_custom_call.1
= control target key start
LH: loop header
LB: loop body
LE: loop exit
PB: predicated region body
PF: predicated region fallthrough
CT: control target
= control target key end

     0   :  { %v334_v1 = vmov 0.0   ;;  %vm44_vm0 = vcmask 130048   ;;  %vm335_vm1 = vmmov 0   ;;  %s424_s0 = inlined_call_operand.vmem [shape: f32[8,32], index: 0, kind: input, shape index: {}]   ;;  %s425_s1 = inlined_call_operand.vmem [shape: f32[8,16], index: 1, kind: input, shape index: {}]   ;;  %s426_s2 = inlined_call_operand.vmem [shape: bf16[32,64], index: 2, kind: input, shape index: {}]   ;;  %s427_s3 = inlined_call_operand.vmem [shape: bf16[16,64], index: 3, kind: input, shape index: {}]   ;;  %s428_s4 = inlined_call_operand.vmem [shape: f32[1,64], index: 4, kind: input, shape index: {}]   ;;  %s429_s5 = inlined_call_operand.vmem [shape: bf16[64,32], index: 5, kind: input, shape index: {}]   ;;  %s430_s6 = inlined_call_operand.vmem [shape: f32[1,32], index: 6, kind: input, shape index: {}]   ;;  %s431_s7 = inlined_call_operand.hbm [shape: f32[8,32], index: 7, kind: output, shape index: {}]  }
   0x1   :  { %v303_v0 = vld [vmem:[%s427_s3] sm:$0xff]   ;;  %274 = vmatprep.subr.bf16.mxu1 %v334_v1  ;;  %288 = vmatprep.subr.bf16.mxu0 %v334_v1  ;;  %v305_v5 = vld [vmem:[%s426_s2 + $0x8] sm:$0xff]  }
   0x2   :  { %v34_v2 = vld [vmem:[%s425_s1] sm:$0xff]  ;;  %275 = vmatpush3.bf16.msra.mxu1 %v303_v0  ;;  %276 = vmatprep.mubr.msk.bf16.mxu1 %vm335_vm1, %v334_v1 }
   0x3   :  { %v304_v3 = vld [vmem:[%s426_s2] sm:$0xff]   ;;  %v35_v4 = vpack.c.bf16 %v34_v2, %v34_v2  ;;  %280 = vmatprep.subr.bf16.mxu1 %v334_v1  ;;  %296 = vmatprep.mubr.msk.bf16.mxu0 %vm335_vm1, %v334_v1 }
   0x4   :  { %v28_v6 = vld [vmem:[%s424_s0] sm:$0xff] }
   0x5   :  { %277 = vmatmul.mubr.msk.bf16.vlgmr.msra.gmra.mrb[0].mxu1 %vm44_vm0, %v35_v4 }
   0x6   :  { %281 = vmatpush3.bf16.msra.mxu1 %v304_v3  ;;  %284 = vmatprep.mubr.msk.bf16.mxu1 %vm335_vm1, %v334_v1 }
   0x7   :  { %12 = vsyncpa [#allocation3], 0  ;;  %282 = vmatprep.subr.bf16.mxu1 %v334_v1  ;;  %v29_v7 = vpack.c.bf16 %v28_v6, %v28_v6  ;;  %vm100_vm2 = vcmask 261120   ;;  %v306_v8 = vld [vmem:[%s429_s5] sm:$0xff]   ;;  %v307_v9 = vld [vmem:[%s429_s5 + $0x8] sm:$0xff]   ;;  %vm193_vm3 = vcmask 523264  }
   0x8   :  { %289 = vmatpush3.bf16.msra.mxu0 %v306_v8  ;;  %v308_v10 = vld [vmem:[%s429_s5 + $0x10] sm:$0xff]   ;;  %v309_v11 = vld [vmem:[%s429_s5 + $0x18] sm:$0xff]   ;;  %v257_v17 = vld [vmem:[%s428_s4] ss:$0 sm:$0xff]  ;;  %s336_s18 = smov [#allocation2]  }
   0x9   :  { %290 = vmatprep.subr.bf16.mxu0 %v334_v1  ;;  %v258_v25 = vld [vmem:[%s430_s6] ss:$0 sm:$0xff]  ;;  %s244_s19 = sshll.u32 %s336_s18, 4  ;;  %s245_s19 = int_to_ptr.vmem [resolvable:$true] %s244_s19 }
   0xa   :  { %283 = vmatpush3.bf16.msra.mxu1 %v305_v5  ;;  %s310_s4 = scalar_lea.vmem %s245_s19, 128  ;;  %p315_p1 = scmp.lt.s32.totalorder %s245_s19, %s245_s19 }
   0xb   :  { %p311_p0 = scmp.ne.s32.totalorder %s245_s19, %s310_s4  ;;  %p316_p2 = scmp.lt.s32.totalorder %s310_s4, %s310_s4 }
   0xc   :  { %291 = vmatpush3.bf16.msra.mxu0 %v307_v9 }
   0xd   :  { %285 = vmatmul.mubr.msk.bf16.vlgmr.msra.gmra.mrb[4].mxu1 %vm100_vm2, %v29_v7  ;;  %292 = vmatprep.subr.bf16.mxu0 %v334_v1  ;;  %p317_p3 = por %p316_p2, %p315_p1 }
   0xf   :  { %p318_p4 = pnand %p317_p3, %p311_p0 }
  0x10   :  { %293 = vmatpush3.bf16.msra.mxu0 %v308_v10 }
  0x11   :  { %294 = vmatprep.subr.bf16.mxu0 %v334_v1 }
  0x14   :  { %295 = vmatpush3.bf16.msra.mxu0 %v309_v11 }
  0xd8   :  { %v82_v12 = vpop.f32.mrb[0].mxu1 }
  0xd9   :  { %v278_v13 = vpop.f32.mrb[1].mxu1 }
  0xda   :  { %v85_v14 = vpop.f32.mrb[2].mxu1 }
  0xdb   :  { %v279_v15 = vpop.f32.mrb[3].mxu1 }
  0xe0   :  { %v138_v16 = vpop.f32.mrb[4].mxu1 }
  0xe1   :  { %v139_v18 = vadd.f32 %v138_v16, %v82_v12  ;;  %v286_v19 = vpop.f32.mrb[5].mxu1 }
  0xe2   :  { %v141_v20 = vpop.f32.mrb[6].mxu1 }
  0xe3   :  { %v151_v21 = vadd.f32 %v257_v17, %v139_v18  ;;  %v287_v22 = vpop.f32.mrb[7].mxu1 }
  0xe5   :  { %v152_v23 = vmax.f32 %v151_v21, 0.0 }
  0xe7   :  { %v153_v24 = vpack.c.bf16 %v152_v23, %v152_v23 }
  0xe9   :  { %297 = vmatmul.mubr.msk.bf16.vlgmr.msra.gmra.mrb[0].mxu0 %vm193_vm3, %v153_v24 }
 0x1bc   :  { %v231_v26 = vpop.f32.mrb[0].mxu0 }
 0x1bd   :  { %v232_v27 = vadd.f32 %v258_v25, %v231_v26  ;;  %v298_v28 = vpop.f32.mrb[1].mxu0 }
 0x1be   :  { %v234_v29 = vpop.f32.mrb[2].mxu0 }
 0x1bf   :  { %237 = vst.msk [vmem:[#allocation2] sm:$0xff] %vm100_vm2, %v232_v27  ;;  %v299_v30 = vpop.f32.mrb[3].mxu0 }
 0x1c0   :  { %321 = shalt.err (!%p318_p4)
}
 0x1c1   :  { %s322_s6 = scalar_lea.hbm %s431_s7, 128 }
 0x1c2   :  { %p323_p5 = scmp.ne.s32.totalorder %s431_s7, %s322_s6  ;;  %p326_p6 = scmp.lt.u32.totalorder %s322_s6, %s431_s7 }
 0x1c4   :  { %p328_p7 = pnand %p326_p6, %p323_p5 }
 0x1c6   :  { %331 = shalt.err (!%p328_p7)
}
 0x1c7   :  { %247 = dma.vmem_to_hbm [thread:$0]  %s245_s19, 128, %s431_s7, [#allocation3]  }
 0x1c8   :  { %332 = dma.done.wait [#allocation3], 128  }
 0x1c9   :  { %333 = vsyncadd [#allocation3], 4294967168 }
 0x1ca   :  { %251 = vsyncpa [#allocation3], 1 }

</bundles_post_ra>
